<compile_context>
chip_gen: v5e
topology: v5e:2x2
jax: 0.10.0
libtpu: 0.0.40
codegen_flags: <defaults>
</compile_context>

<pallas_src>
import numpy as np
from enum import Enum

import jax
import jax.numpy as jnp
from jax.experimental import pallas as pl
from jax.experimental.pallas import tpu as pltpu

EULER_GAMMA = 0.57721566
FREQMAX = 100
FREQMIN = 1

ITU_TABLE = np.array([
    [1.0, 2.0, 4.0, 6.0, 7.0, 8.0, 10.0, 12.0, 15.0, 20.0, 25.0, 30.0, 35.0,
     40.0, 45.0, 50.0, 60.0, 70.0, 80.0, 90.0, 100.0],
    [3.87e-05, 0.0002, 0.0006, 0.0018, 0.003, 0.0045, 0.0101, 0.0188, 0.0367,
     0.0751, 0.124, 0.187, 0.263, 0.35, 0.442, 0.536, 0.707, 0.851, 0.975,
     1.06, 1.12],
    [3.52e-05, 0.0001, 0.0006, 0.0016, 0.0026, 0.004, 0.0089, 0.0168, 0.0335,
     0.0691, 0.113, 0.167, 0.233, 0.31, 0.393, 0.479, 0.642, 0.784, 0.906,
     0.999, 1.06],
    [0.912, 0.963, 1.121, 1.308, 1.332, 1.327, 1.276, 1.217, 1.154, 1.099,
     1.061, 1.021, 0.979, 0.939, 0.903, 0.873, 0.826, 0.793, 0.769, 0.753,
     0.743],
    [0.88, 0.923, 1.075, 1.265, 1.312, 1.31, 1.264, 1.2, 1.128, 1.065, 1.03,
     1.0, 0.963, 0.929, 0.897, 0.868, 0.824, 0.793, 0.769, 0.754, 0.744]])


# ----------------------------------------------------------------------------
# Host-side (numpy) ITU parameter lookup — cubic spline with not-a-knot
# boundary conditions (matches scipy.interpolate.interp1d(kind='cubic')).
# ----------------------------------------------------------------------------
def _cubic_spline_eval(xk, yk, xq):
    xk = np.asarray(xk, dtype=np.float64)
    yk = np.asarray(yk, dtype=np.float64)
    n = xk.size
    h = np.diff(xk)
    A = np.zeros((n, n), dtype=np.float64)
    rhs = np.zeros(n, dtype=np.float64)
    for i in range(1, n - 1):
        A[i, i - 1] = h[i - 1]
        A[i, i] = 2.0 * (h[i - 1] + h[i])
        A[i, i + 1] = h[i]
        rhs[i] = 6.0 * ((yk[i + 1] - yk[i]) / h[i] - (yk[i] - yk[i - 1]) / h[i - 1])
    # not-a-knot: S''' continuous at x_1 and x_{n-2}
    A[0, 0] = h[1]
    A[0, 1] = -(h[0] + h[1])
    A[0, 2] = h[0]
    A[-1, -3] = h[-2]
    A[-1, -2] = -(h[-3] + h[-2])
    A[-1, -1] = h[-3]
    M = np.linalg.solve(A, rhs)

    xq = np.asarray(xq, dtype=np.float64)
    scalar = (xq.ndim == 0)
    xq = np.atleast_1d(xq)
    idx = np.clip(np.searchsorted(xk, xq) - 1, 0, n - 2)
    t = xq - xk[idx]
    hi = h[idx]
    c1 = (yk[idx + 1] - yk[idx]) / hi - hi * (2.0 * M[idx] + M[idx + 1]) / 6.0
    val = (yk[idx] + c1 * t + 0.5 * M[idx] * t ** 2
           + (M[idx + 1] - M[idx]) / (6.0 * hi) * t ** 3)
    return val[0] if scalar else val


def a_b_parameters(frequency: float, polarization: bool):
    freq = np.asarray(frequency)
    if freq.min() < FREQMIN or freq.max() > FREQMAX:
        raise ValueError('Frequency must be between {} Ghz and {} GHz.'.format(FREQMIN, FREQMAX))
    if polarization == 1:
        a = _cubic_spline_eval(ITU_TABLE[0, :], ITU_TABLE[2, :], freq)
        b = _cubic_spline_eval(ITU_TABLE[0, :], ITU_TABLE[4, :], freq)
    elif polarization == 0:
        a = _cubic_spline_eval(ITU_TABLE[0, :], ITU_TABLE[1, :], freq)
        b = _cubic_spline_eval(ITU_TABLE[0, :], ITU_TABLE[3, :], freq)
    else:
        raise ValueError('Polarization must be 0 (horizontal) or 1 (vertical).')
    return a, b


class PowerLawType(Enum):
    INSTANCE = 0
    MAX = 1


# ----------------------------------------------------------------------------
# Pallas kernel: elementwise rain = exp(beta*log(x) + log_alpha), zeroed below
# the precomputed attenuation threshold x_thresh = (r_min/alpha)**(1/beta).
# ----------------------------------------------------------------------------
_LANES = 128
_SINGLE_BLOCK_ROWS = 512   # <= 256 KiB inputs run as one un-gridded block
_MIN_BLOCK_ROWS = 512      # smallest gridded tile (256 KiB)
_MAX_BLOCK_ROWS = 8192     # biggest tile: 4 MiB; ~16 MiB with in+out dbl-buffer
_TARGET_GRID_STEPS = 8     # aim for >=8 pipeline steps (>=2 TCs on v7x)


def _power_law_kernel(params_ref, x_ref, o_ref):
    """params_ref (SMEM f32[3]) = [beta, log(alpha), x_thresh].

    x <  x_thresh  <=>  alpha * relu(x)**beta < r_min   (x_thresh > 0, so the
    relu is subsumed).  NaN: `NaN < x_thresh` is False, so NaN flows through
    the power-law branch exactly like PyTorch's `rain[rain < r_min] = 0`.
    """
    beta = params_ref[0]
    log_alpha = params_ref[1]
    x_thresh = params_ref[2]
    x = x_ref[...]
    # clamp keeps log() finite for x<=0 and for the don't-care lanes of a
    # ragged final block (their writes are masked by Pallas anyway).
    y = jnp.exp(beta * jnp.log(jnp.maximum(x, 1e-30)) + log_alpha)
    o_ref[...] = jnp.where(x < x_thresh, 0.0, y)


def _choose_block_rows(rows: int) -> int:
    if rows <= _SINGLE_BLOCK_ROWS:
        return rows                                # full-extent block, grid==1
    target = -(-rows // _TARGET_GRID_STEPS)        # ~8 grid steps
    target = ((target + 7) // 8) * 8               # sublane-aligned
    return int(min(_MAX_BLOCK_ROWS, max(_MIN_BLOCK_ROWS, target)))


def _power_law_2d(x2d, params):
    rows, lanes = x2d.shape
    block_rows = _choose_block_rows(rows)
    grid = (pl.cdiv(rows, block_rows),)            # ragged final block is masked
    return pl.pallas_call(
        _power_law_kernel,
        out_shape=jax.ShapeDtypeStruct((rows, lanes), jnp.float32),
        grid=grid,
        in_specs=[
            pl.BlockSpec(memory_space=pltpu.MemorySpace.SMEM),   # params
            pl.BlockSpec((block_rows, lanes), lambda i: (i, 0)),  # x tile
        ],
        out_specs=pl.BlockSpec((block_rows, lanes), lambda i: (i, 0)),
        compiler_params=pltpu.CompilerParams(
            dimension_semantics=("parallel",),
            vmem_limit_bytes=32 * 1024 * 1024),
    )(params, x2d)


@jax.jit
def _power_law_forward(x, params):
    """x: any-shape f32 array; params: f32[3] = [beta, log_alpha, x_thresh]."""
    orig_shape = x.shape
    x_flat = x.reshape(-1)
    n = x_flat.shape[0]
    if n == 0:
        return jnp.zeros(orig_shape, jnp.float32)

    n_tail = n % _LANES
    n_main = n - n_tail

    pieces = []
    if n_main:
        x_main = x_flat if n_tail == 0 else x_flat[:n_main]
        x2d = x_main.reshape(n_main // _LANES, _LANES)
        pieces.append(_power_law_2d(x2d, params).reshape(-1))
    if n_tail:
        # <=127-element ragged tail: plain jnp, avoids whole-array pad/slice.
        x_tail = x_flat[n_main:]
        y = jnp.exp(params[0] * jnp.log(jnp.maximum(x_tail, 1e-30)) + params[1])
        pieces.append(jnp.where(x_tail < params[2], 0.0, y))

    out_flat = pieces[0] if len(pieces) == 1 else jnp.concatenate(pieces)
    return out_flat.reshape(orig_shape)


class PowerLaw:
    """JAX/Pallas port of pynncml PowerLaw."""

    def __init__(self, input_type: PowerLawType, r_min: float, k: int = 90):
        self.r_min = float(r_min)
        self.k = int(k)
        self.input_type = input_type

    def __call__(self, input_attenuation, length: float, frequency: float,
                 polarization: bool):
        # TODO(synk): ITU a/b lookup (scipy cubic interp1d) has no Pallas
        # equivalent; reproduced host-side in numpy (scalar frequency only).
        a, b = a_b_parameters(frequency, polarization)
        a = float(a)
        b = float(b)
        if self.input_type == PowerLawType.MAX:
            a = a * (np.log(self.k) + EULER_GAMMA) ** b
        beta = 1.0 / b
        alpha = float(np.power(1.0 / (a * length), beta))
        log_alpha = float(np.log(alpha))
        if self.r_min > 0:
            x_thresh = float(np.power(self.r_min / alpha, b))  # (r_min/alpha)**(1/beta)
        else:
            x_thresh = float(np.finfo(np.float32).tiny)
        # Params travel as a traced (3,) f32 SMEM operand -> changing
        # frequency / length / r_min never retraces or recompiles the kernel.
        params = jnp.asarray(np.array([beta, log_alpha, x_thresh], np.float32))
        x = jnp.asarray(input_attenuation, dtype=jnp.float32)
        return _power_law_forward(x, params)


# ----------------------------------------------------------------------------
# Self-test
# ----------------------------------------------------------------------------
if __name__ == "__main__":
    key = jax.random.PRNGKey(0)
    k0, k1, k2 = jax.random.split(key, 3)

    length = 3.2        # km
    frequency = 23.0    # GHz
    polarization = True
    r_min = 0.3

    def reference(x, input_type, k=90):
        a, b = a_b_parameters(frequency, polarization)
        a = float(a)
        b = float(b)
        if input_type == PowerLawType.MAX:
            a = a * (np.log(k) + EULER_GAMMA) ** b
        beta = 1.0 / b
        alpha = np.power(1.0 / (a * length), beta)
        xx = np.asarray(x, dtype=np.float64)
        att = xx * (xx > 0)
        rain = alpha * np.power(att, beta)
        rain = np.where(rain < r_min, 0.0, rain)
        x_thresh = np.power(r_min / alpha, b)
        return rain, x_thresh

    def check(out, x, input_type):
        ref, x_thresh = reference(x, input_type)
        out = np.asarray(out)
        xx = np.asarray(x, dtype=np.float64)
        # Elements sitting essentially on the r_min threshold may flip between
        # 0 and ~r_min from f32 rounding differences; excuse a hair-thin band
        # around the analytic attenuation threshold.
        near = np.abs(xx - x_thresh) <= 1e-4 * (x_thresh + 1.0)
        ok = np.isclose(out, ref, rtol=3e-5, atol=1e-5) | near
        assert bool(ok.all()), "mismatches: %d" % int(np.count_nonzero(~ok))

    module = PowerLaw(PowerLawType.INSTANCE, r_min=r_min, k=90)
    module_max = PowerLaw(PowerLawType.MAX, r_min=r_min, k=90)

    # --- small, lane-aligned (2*4*16*16 = 2048): single-block path ----------
    x_small = 5.0 * jax.random.normal(k0, (2, 4, 16, 16), dtype=jnp.float32)
    out_small = jax.block_until_ready(module(x_small, length, frequency, polarization))
    assert out_small.shape == x_small.shape and out_small.dtype == jnp.float32
    check(out_small, x_small, PowerLawType.INSTANCE)

    # --- MAX power-law branch (same shape -> reuses the compiled kernel) ----
    out_max = jax.block_until_ready(module_max(x_small, length, frequency, polarization))
    assert out_max.shape == x_small.shape
    check(out_max, x_small, PowerLawType.MAX)

    # --- misaligned size (2*3*50 = 300): aligned-prefix kernel + jnp tail ---
    x_odd = 5.0 * jax.random.normal(k1, (2, 3, 50), dtype=jnp.float32)
    out_odd = jax.block_until_ready(module(x_odd, length, frequency, polarization))
    assert out_odd.shape == x_odd.shape
    check(out_odd, x_odd, PowerLawType.INSTANCE)

    # --- larger input (2*4*250*160 = 320000 -> 2500x128 slab): gridded path
    #     with 512-row blocks and a ragged, masked final block ---------------
    x_big = 5.0 * jax.random.normal(k2, (2, 4, 250, 160), dtype=jnp.float32)
    out_big = jax.block_until_ready(module(x_big, length, frequency, polarization))
    assert out_big.shape == x_big.shape
    check(out_big, x_big, PowerLawType.INSTANCE)

    print("KERNEL_OK")
</pallas_src>

<mosaic_0001>
module attributes {stable_mosaic.version = 11 : i64} {
  func.func @_power_law_kernel(%arg0: i32, %arg1: memref<3xf32, #tpu.memory_space<smem>>, %arg2: memref<16x128xf32, #tpu.memory_space<vmem>>, %arg3: memref<16x128xf32, #tpu.memory_space<vmem>>) attributes {dimension_semantics = [#tpu.dimension_semantics<parallel>], iteration_bounds = array<i64: 1>, scalar_prefetch = 0 : i64, scratch_operands = 0 : i64, tpu.core_type = #tpu.core_type<tc>, window_params = [{transform_indices = @transform_0, window_bounds = array<i64: 3>}, {transform_indices = @transform_1, window_bounds = array<i64: 16, 128>}, {transform_indices = @transform_2, window_bounds = array<i64: 16, 128>}]} {
    %c0 = arith.constant 0 : index
    %0 = memref.load %arg1[%c0] : memref<3xf32, #tpu.memory_space<smem>>
    %c1 = arith.constant 1 : index
    %1 = memref.load %arg1[%c1] : memref<3xf32, #tpu.memory_space<smem>>
    %c2 = arith.constant 2 : index
    %2 = memref.load %arg1[%c2] : memref<3xf32, #tpu.memory_space<smem>>
    %c0_0 = arith.constant 0 : index
    %c0_1 = arith.constant 0 : index
    %3 = vector.load %arg2[%c0_0, %c0_1] : memref<16x128xf32, #tpu.memory_space<vmem>>, vector<16x128xf32>
    %cst = arith.constant 1.000000e-30 : f32
    %4 = vector.broadcast %cst : f32 to vector<16x128xf32>
    %5 = arith.maximumf %3, %4 : vector<16x128xf32>
    %6 = math.log %5 : vector<16x128xf32>
    %7 = vector.broadcast %0 : f32 to vector<16x128xf32>
    %8 = arith.mulf %7, %6 : vector<16x128xf32>
    %9 = vector.broadcast %1 : f32 to vector<16x128xf32>
    %10 = arith.addf %8, %9 : vector<16x128xf32>
    %11 = math.exp %10 : vector<16x128xf32>
    %12 = vector.broadcast %2 : f32 to vector<16x128xf32>
    %13 = arith.cmpf olt, %3, %12 : vector<16x128xf32>
    %cst_2 = arith.constant 0.000000e+00 : f32
    %14 = vector.broadcast %cst_2 : f32 to vector<16x128xf32>
    %15 = arith.select %13, %14, %11 : vector<16x128xi1>, vector<16x128xf32>
    %c0_3 = arith.constant 0 : index
    %c0_4 = arith.constant 0 : index
    %16 = vector.load %arg3[%c0_3, %c0_4] : memref<16x128xf32, #tpu.memory_space<vmem>>, vector<16x128xf32>
    tpu.vector_store %arg3[%c0_3, %c0_4], %15 {strides = array<i32>} : memref<16x128xf32, #tpu.memory_space<vmem>>, vector<16x128xf32>,
    return
  }
  func.func @transform_0(%arg0: i32) -> i32 {
    %c0_i32 = arith.constant 0 : i32
    %c0_i32_0 = arith.constant 0 : i32
    return %c0_i32 : i32
  }
  func.func @transform_1(%arg0: i32) -> (i32, i32) {
    %c0_i32 = arith.constant 0 : i32
    %c0_i32_0 = arith.constant 0 : i32
    return %arg0, %c0_i32 : i32, i32
  }
  func.func @transform_2(%arg0: i32) -> (i32, i32) {
    %c0_i32 = arith.constant 0 : i32
    %c0_i32_0 = arith.constant 0 : i32
    return %arg0, %c0_i32 : i32, i32
  }
}

</mosaic_0001>

<bundles_post_ra>
// kernel: _power_law_forward.1
= control target key start
LH: loop header
LB: loop body
LE: loop exit
PB: predicated region body
PF: predicated region fallthrough
CT: control target
= control target key end

     0   :  { %7 = vsyncpa [#allocation3], 0  ;;  %s82_s12 = smov [#allocation2]   ;;  %s113_s0 = inlined_call_operand.vmem [shape: f32[3], index: 0, kind: input, shape index: {}]   ;;  %s114_s1 = inlined_call_operand.vmem [shape: f32[16,128], index: 1, kind: input, shape index: {}]   ;;  %s115_s2 = inlined_call_operand.vmem [shape: f32[16,128], index: 2, kind: output, shape index: {}]  }
   0x1   :  { %s13_s11 = sshll.u32 %s113_s0, 4  ;;  %s14_s11 = int_to_ptr.vmem [resolvable:$true] %s13_s11 }
   0x2   :  { %16 = dma.vmem_to_smem %s14_s11, 16, %s82_s12, [#allocation3]  }
   0x3   :  { %80 = dma.done.wait [#allocation3], 16  }
   0x4   :  { %81 = vsyncadd [#allocation3], 4294967280 }
   0x5   :  { %23 = sfence }
   0x6   :  { %v27_v0 = vld [vmem:[%s114_s1] sm:$0xff]  ;;  %v28_v1 = vld [vmem:[%s114_s1 + $0x8] sm:$0xff]  ;;  %s24_s17 = sld [smem:[#allocation2]] }
   0x7   :  { %v29_v2 = vmax.f32 %v27_v0, 1e-30  ;;  %v30_v3 = vmax.f32 %v28_v1, 1e-30  ;;  %s57_s18 = sld [smem:[#allocation2 + $0x1]] }
   0x8   :  { %s58_s0 = sld [smem:[#allocation2 + $0x2]] }
   0x9   :  { %60 = vlog2.f32 %v29_v2 }
   0xa   :  { %62 = vlog2.f32 %v30_v3 }
   0xc   :  { %v35_v5 = vstv %s24_s17 }
   0xd   :  { %v38_v8 = vstv %s57_s18 }
   0xe   :  { %v45_v16 = vstv %s58_s0 }
   0xf   :  { %v61_v4 = vpop.eup %60  ;;  %vm46_vm0 = vcmp.lt.f32.partialorder %v27_v0, %v45_v16  ;;  %vm47_vm1 = vcmp.lt.f32.partialorder %v28_v1, %v45_v16 }
  0x10   :  { %v63_v6 = vpop.eup %62  ;;  %v32_v7 = vmul.f32 0.6931472, %v61_v4 }
  0x11   :  { %v34_v9 = vmul.f32 0.6931472, %v63_v6 }
  0x12   :  { %v36_v10 = vmul.f32 %v35_v5, %v32_v7 }
  0x13   :  { %v37_v11 = vmul.f32 %v35_v5, %v34_v9 }
  0x14   :  { %v39_v12 = vadd.f32 %v38_v8, %v36_v10 }
  0x15   :  { %v40_v13 = vadd.f32 %v38_v8, %v37_v11 }
  0x16   :  { %v41_v14 = vmul.f32 1.442695, %v39_v12 }
  0x17   :  { %v43_v15 = vmul.f32 1.442695, %v40_v13 }
  0x18   :  { %64 = vpow2.f32 %v41_v14 }
  0x19   :  { %66 = vpow2.f32 %v43_v15 }
  0x1e   :  { %v65_v17 = vpop.eup %64 }
  0x1f   :  { %v67_v18 = vpop.eup %66  ;;  %v48_v19 = vsel %vm46_vm0, 0.0, %v65_v17 }
  0x20   :  { %50 = vst [vmem:[%s115_s2] sm:$0xff] %v48_v19  ;;  %v49_v20 = vsel %vm47_vm1, 0.0, %v67_v18 }
  0x21   :  { %51 = vst [vmem:[%s115_s2 + $0x8] sm:$0xff] %v49_v20 }
  0x22   :  { %56 = vsyncpa [#allocation3], 1 }

</bundles_post_ra>
